<compile_context>
chip_gen: v5e
topology: v5e:2x2
jax: 0.10.0
libtpu: 0.0.40
codegen_flags: <defaults>
</compile_context>

<pallas_src>
import jax
import jax.numpy as jnp
from jax import lax
from jax.experimental import pallas as pl
from jax.experimental.pallas import tpu as pltpu


D_IN = 128            # fixed by the module: nn.Linear(128, 64)
_VMEM_LIMIT = 48 * 1024 * 1024   # explicit scoped-VMEM cap (safe on v5e/v6e/v7x)


def _cdiv(a, b):
    return -(-a // b)


def _round_up(a, m):
    return _cdiv(a, m) * m


# --------------------------------------------------------------------------
# pass 1: per-feature sum / sum-of-squares, accumulated per batch split
# --------------------------------------------------------------------------
def _stats_kernel(x_ref, sum_ref, sumsq_ref):
    @pl.when(pl.program_id(1) == 0)
    def _():
        sum_ref[...] = jnp.zeros_like(sum_ref)
        sumsq_ref[...] = jnp.zeros_like(sumsq_ref)

    x = x_ref[...]                                     # (tb, 128)
    # vreg-aligned regroup: reduce over the leading (vreg-count) axis only,
    # keeping the (8, 128) sublane/lane structure -> pure VPU adds, no XLU.
    xg = x.reshape(x.shape[0] // 8, 8, x.shape[1])     # (tb//8, 8, 128)
    sum_ref[...] += jnp.sum(xg, axis=0, keepdims=True)          # (1, 8, 128)
    sumsq_ref[...] += jnp.sum(xg * xg, axis=0, keepdims=True)   # (1, 8, 128)


# --------------------------------------------------------------------------
# pass 2: (normalization pre-folded into w1/b1) -> fc1 -> z^2 -> fc2
# --------------------------------------------------------------------------
def _detector_kernel(x_ref, w1_ref, b1_ref, w2_ref, b2_ref, o_ref):
    z1 = jnp.dot(x_ref[...], w1_ref[...],
                 preferred_element_type=jnp.float32) + b1_ref[...]
    # TODO(synk): ReLU_Poly assumed to be the square polynomial z^2.
    z2 = z1 * z1
    o_ref[...] = (
        jnp.dot(z2, w2_ref[...], preferred_element_type=jnp.float32)
        + b2_ref[...]
    ).astype(o_ref.dtype)


def _batch_tiling(batch, max_tile):
    """cdiv-based tiling: tiles of (rounded-up) equal size, tile count forced
    even when > 1 so the stats pass can split 2-ways across TensorCores."""
    n_tiles = _cdiv(batch, max_tile)
    if n_tiles > 1 and n_tiles % 2:
        n_tiles += 1
    tb = _round_up(_cdiv(batch, n_tiles), 8)   # sublane granularity
    return tb, n_tiles


def convmixer_detector(x, w1, b1, w2, b2, *, max_tile_b=8192):
    """x: (B, 128); w1: (128, H); b1: (1, H); w2: (H, C); b2: (1, C)."""
    B, d_in = x.shape
    assert d_in == D_IN, "detector expects 128 input features"
    hid = w1.shape[1]
    n_classes = w2.shape[1]

    # Zero-pad the hidden dim to full 128-lane width (numerically exact).
    hid_p = _round_up(max(hid, 128), 128)
    w1p = jnp.pad(w1, ((0, 0), (0, hid_p - hid))).astype(jnp.float32)
    b1p = jnp.pad(b1.reshape(1, -1), ((0, 0), (0, hid_p - hid))).astype(jnp.float32)
    w2p = jnp.pad(w2, ((0, hid_p - hid), (0, 0))).astype(jnp.float32)
    b2r = b2.reshape(1, -1).astype(jnp.float32)

    # ---- batch tiling: cdiv grid + zero-padding (exact for the statistics,
    #      since mean/var below use the true B; padded rows sliced off at end).
    tb, n_tiles = _batch_tiling(B, max_tile_b)
    Bp = tb * n_tiles
    xp = x.astype(jnp.float32)
    if Bp != B:
        xp = jnp.pad(xp, ((0, Bp - B), (0, 0)))

    n_split = 2 if n_tiles >= 2 else 1         # 2-way TC split when possible
    tiles_per_split = n_tiles // n_split

    # ---- pass 1: batch statistics ------------------------------------------
    psum, psumsq = pl.pallas_call(
        _stats_kernel,
        out_shape=(jax.ShapeDtypeStruct((n_split, 8, D_IN), jnp.float32),
                   jax.ShapeDtypeStruct((n_split, 8, D_IN), jnp.float32)),
        grid=(n_split, tiles_per_split),
        in_specs=[pl.BlockSpec(
            (tb, D_IN), lambda c, i: (c * tiles_per_split + i, 0))],
        out_specs=(pl.BlockSpec((1, 8, D_IN), lambda c, i: (c, 0, 0)),
                   pl.BlockSpec((1, 8, D_IN), lambda c, i: (c, 0, 0))),
        compiler_params=pltpu.CompilerParams(
            dimension_semantics=("parallel", "arbitrary"),
            vmem_limit_bytes=_VMEM_LIMIT),
    )(xp)

    # ---- fold normalization into fc1 (tiny XLA ops) -------------------------
    s = jnp.sum(psum, axis=(0, 1))                       # (128,)
    ss = jnp.sum(psumsq, axis=(0, 1))                    # (128,)
    mean = s / jnp.float32(B)
    # unbiased one-pass variance; clamp to avoid f32 cancellation -> NaN rsqrt.
    var = (ss - s * mean) / jnp.float32(max(B - 1, 1))   # B==1 degenerate, as in torch
    var = jnp.maximum(var, jnp.float32(0.0))
    inv_std = lax.rsqrt(var)                             # (128,)
    w1_eff = w1p * inv_std[:, None]                      # (128, hid_p)
    b1_eff = b1p - (mean * inv_std)[None, :] @ w1p       # (1, hid_p)

    # ---- pass 2: fc1 + poly + fc2, batch axis parallel, unpadded output -----
    out_p = pl.pallas_call(
        _detector_kernel,
        out_shape=jax.ShapeDtypeStruct((Bp, n_classes), jnp.float32),
        grid=(n_tiles,),
        in_specs=[
            pl.BlockSpec((tb, D_IN), lambda i: (i, 0)),        # x tile
            pl.BlockSpec((D_IN, hid_p), lambda i: (0, 0)),     # w1_eff
            pl.BlockSpec((1, hid_p), lambda i: (0, 0)),        # b1_eff
            pl.BlockSpec((hid_p, n_classes), lambda i: (0, 0)),  # w2 (row-padded)
            pl.BlockSpec((1, n_classes), lambda i: (0, 0)),    # b2
        ],
        out_specs=pl.BlockSpec((tb, n_classes), lambda i: (i, 0)),
        compiler_params=pltpu.CompilerParams(
            dimension_semantics=("parallel",),
            vmem_limit_bytes=_VMEM_LIMIT),
    )(xp, w1_eff, b1_eff, w2p, b2r)

    return out_p if Bp == B else out_p[:B]


# --------------------------------------------------------------------------
# test harness
# --------------------------------------------------------------------------
def _init_linear(key, fan_in, fan_out):
    """PyTorch-style uniform(-1/sqrt(fan_in), 1/sqrt(fan_in)) init.

    Returns weight already transposed to (fan_in, fan_out) and bias (1, fan_out).
    """
    kw, kb = jax.random.split(key)
    bound = 1.0 / jnp.sqrt(jnp.float32(fan_in))
    w = jax.random.uniform(kw, (fan_in, fan_out), jnp.float32, -bound, bound)
    b = jax.random.uniform(kb, (1, fan_out), jnp.float32, -bound, bound)
    return w, b


def _reference(x, w1, b1, w2, b2):
    mean = jnp.mean(x, axis=0, keepdims=True)
    std = jnp.std(x, axis=0, ddof=1, keepdims=True)
    xn = (x - mean) / std
    z1 = jnp.dot(xn, w1, precision=lax.Precision.HIGHEST) + b1
    z2 = z1 * z1
    return jnp.dot(z2, w2, precision=lax.Precision.HIGHEST) + b2


if __name__ == "__main__":
    key = jax.random.PRNGKey(0)
    k_x, k_fc1, k_fc2 = jax.random.split(key, 3)

    B = 8            # small batch
    D_HID = 64       # fc1 output dim
    N_CLASSES = 4    # small synthetic class count

    x = jax.random.normal(k_x, (B, D_IN), jnp.float32)
    w1, b1 = _init_linear(k_fc1, D_IN, D_HID)
    w2, b2 = _init_linear(k_fc2, D_HID, N_CLASSES)

    out = convmixer_detector(x, w1, b1, w2, b2)
    out = jax.block_until_ready(out)

    ref = _reference(x, w1, b1, w2, b2)
    assert out.shape == (B, N_CLASSES)
    assert jnp.allclose(out, ref, atol=1e-3, rtol=1e-3), "mismatch vs reference"

    print("KERNEL_OK")
</pallas_src>

<mosaic_0001>
module attributes {stable_mosaic.version = 11 : i64} {
  func.func @_stats_kernel(%arg0: i32, %arg1: i32, %arg2: memref<8x128xf32, #tpu.memory_space<vmem>>, %arg3: memref<1x8x128xf32, #tpu.memory_space<vmem>>, %arg4: memref<1x8x128xf32, #tpu.memory_space<vmem>>) attributes {dimension_semantics = [#tpu.dimension_semantics<parallel>, #tpu.dimension_semantics<arbitrary>], iteration_bounds = array<i64: 1, 1>, scalar_prefetch = 0 : i64, scratch_operands = 0 : i64, tpu.core_type = #tpu.core_type<tc>, window_params = [{transform_indices = @transform_0, window_bounds = array<i64: 8, 128>}, {transform_indices = @transform_1, window_bounds = array<i64: 1, 8, 128>}, {transform_indices = @transform_2, window_bounds = array<i64: 1, 8, 128>}]} {
    %c0_i32 = arith.constant 0 : i32
    %0 = arith.cmpi eq, %arg1, %c0_i32 : i32
    %1 = arith.extui %0 : i1 to i32
    %c0_i32_0 = arith.constant 0 : i32
    %2 = arith.cmpi ne, %1, %c0_i32_0 : i32
    scf.if %2 {
      %cst_15 = arith.constant 0.000000e+00 : f32
      %16 = vector.broadcast %cst_15 : f32 to vector<1x8x128xf32>
      %c0_16 = arith.constant 0 : index
      %c0_17 = arith.constant 0 : index
      %c0_18 = arith.constant 0 : index
      %17 = vector.load %arg3[%c0_16, %c0_17, %c0_18] : memref<1x8x128xf32, #tpu.memory_space<vmem>>, vector<1x8x128xf32>
      tpu.vector_store %arg3[%c0_16, %c0_17, %c0_18], %16 {strides = array<i32>} : memref<1x8x128xf32, #tpu.memory_space<vmem>>, vector<1x8x128xf32>,
      %cst_19 = arith.constant 0.000000e+00 : f32
      %18 = vector.broadcast %cst_19 : f32 to vector<1x8x128xf32>
      %c0_20 = arith.constant 0 : index
      %c0_21 = arith.constant 0 : index
      %c0_22 = arith.constant 0 : index
      %19 = vector.load %arg4[%c0_20, %c0_21, %c0_22] : memref<1x8x128xf32, #tpu.memory_space<vmem>>, vector<1x8x128xf32>
      tpu.vector_store %arg4[%c0_20, %c0_21, %c0_22], %18 {strides = array<i32>} : memref<1x8x128xf32, #tpu.memory_space<vmem>>, vector<1x8x128xf32>,
    } else {
    }
    %c0 = arith.constant 0 : index
    %c0_1 = arith.constant 0 : index
    %3 = vector.load %arg2[%c0, %c0_1] : memref<8x128xf32, #tpu.memory_space<vmem>>, vector<8x128xf32>
    %4 = vector.shape_cast %3 : vector<8x128xf32> to vector<1x8x128xf32>
    %c0_2 = arith.constant 0 : index
    %c0_3 = arith.constant 0 : index
    %c0_4 = arith.constant 0 : index
    %5 = vector.load %arg3[%c0_2, %c0_3, %c0_4] : memref<1x8x128xf32, #tpu.memory_space<vmem>>, vector<1x8x128xf32>
    %cst = arith.constant dense<0.000000e+00> : vector<8x128xf32>
    %6 = vector.multi_reduction <add>, %4, %cst [0] : vector<1x8x128xf32> to vector<8x128xf32>
    %7 = vector.shape_cast %6 : vector<8x128xf32> to vector<1x8x128xf32>
    %8 = arith.addf %5, %7 : vector<1x8x128xf32>
    %c0_5 = arith.constant 0 : index
    %c0_6 = arith.constant 0 : index
    %c0_7 = arith.constant 0 : index
    %9 = vector.load %arg3[%c0_5, %c0_6, %c0_7] : memref<1x8x128xf32, #tpu.memory_space<vmem>>, vector<1x8x128xf32>
    tpu.vector_store %arg3[%c0_5, %c0_6, %c0_7], %8 {strides = array<i32>} : memref<1x8x128xf32, #tpu.memory_space<vmem>>, vector<1x8x128xf32>,
    %c0_8 = arith.constant 0 : index
    %c0_9 = arith.constant 0 : index
    %c0_10 = arith.constant 0 : index
    %10 = vector.load %arg4[%c0_8, %c0_9, %c0_10] : memref<1x8x128xf32, #tpu.memory_space<vmem>>, vector<1x8x128xf32>
    %11 = arith.mulf %4, %4 : vector<1x8x128xf32>
    %cst_11 = arith.constant dense<0.000000e+00> : vector<8x128xf32>
    %12 = vector.multi_reduction <add>, %11, %cst_11 [0] : vector<1x8x128xf32> to vector<8x128xf32>
    %13 = vector.shape_cast %12 : vector<8x128xf32> to vector<1x8x128xf32>
    %14 = arith.addf %10, %13 : vector<1x8x128xf32>
    %c0_12 = arith.constant 0 : index
    %c0_13 = arith.constant 0 : index
    %c0_14 = arith.constant 0 : index
    %15 = vector.load %arg4[%c0_12, %c0_13, %c0_14] : memref<1x8x128xf32, #tpu.memory_space<vmem>>, vector<1x8x128xf32>
    tpu.vector_store %arg4[%c0_12, %c0_13, %c0_14], %14 {strides = array<i32>} : memref<1x8x128xf32, #tpu.memory_space<vmem>>, vector<1x8x128xf32>,
    return
  }
  func.func @transform_0(%arg0: i32, %arg1: i32) -> (i32, i32) {
    %c1_i32 = arith.constant 1 : i32
    %0 = arith.muli %arg0, %c1_i32 : i32
    %1 = arith.addi %0, %arg1 : i32
    %c0_i32 = arith.constant 0 : i32
    %c0_i32_0 = arith.constant 0 : i32
    return %1, %c0_i32 : i32, i32
  }
  func.func @transform_1(%arg0: i32, %arg1: i32) -> (i32, i32, i32) {
    %c0_i32 = arith.constant 0 : i32
    %c0_i32_0 = arith.constant 0 : i32
    %c0_i32_1 = arith.constant 0 : i32
    return %arg0, %c0_i32, %c0_i32_0 : i32, i32, i32
  }
  func.func @transform_2(%arg0: i32, %arg1: i32) -> (i32, i32, i32) {
    %c0_i32 = arith.constant 0 : i32
    %c0_i32_0 = arith.constant 0 : i32
    %c0_i32_1 = arith.constant 0 : i32
    return %arg0, %c0_i32, %c0_i32_0 : i32, i32, i32
  }
}

</mosaic_0001>

<bundles_post_ra>
// kernel: tpu_custom_call.1
= control target key start
LH: loop header
LB: loop body
LE: loop exit
PB: predicated region body
PF: predicated region fallthrough
CT: control target
= control target key end

     0   :  { %8 = vsyncpa [#allocation3], 0  ;;  %s188_s0 = inlined_call_operand.hbm [shape: f32[8,128], index: 0, kind: input, shape index: {}]   ;;  %s189_s1 = inlined_call_operand.hbm [shape: f32[1,8,128], index: 1, kind: output, shape index: {0}]   ;;  %s190_s2 = inlined_call_operand.hbm [shape: f32[1,8,128], index: 2, kind: output, shape index: {1}]  }
   0x1   :  { %9 = vsyncpa [#allocation4], 0 }
   0x2   :  { %10 = vsyncpa [#allocation7], 0  ;;  %s19_s11 = sshll.u32 %s188_s0, 4  ;;  %s161_s12 = smov [#allocation2]   ;;  %s20_s11 = int_to_ptr.hbm [resolvable:$true] %s19_s11 }
   0x3   :  { %s21_s13 = sshll.u32 %s161_s12, 4  ;;  %s22_s13 = int_to_ptr.vmem [resolvable:$true] %s21_s13 }
   0x4   :  { %24 = dma.hbm_to_vmem [thread:$0]  %s20_s11, 128, %s22_s13, [#allocation3]  }
   0x5   :  { %155 = dma.done.wait [#allocation3], 128  }
   0x6   :  { %156 = vsyncadd [#allocation3], 4294967168  ;;  %s162_s14 = smov [#allocation5]   ;;  %s53_s18 = sshll.u32 %s189_s1, 4  ;;  %v36_v0 = vld [vmem:[#allocation2] sm:$0xff]  ;;  %s54_s18 = int_to_ptr.hbm [resolvable:$true] %s53_s18 }
   0x7   :  { %s51_s15 = sshll.u32 %s162_s14, 4  ;;  %s163_s19 = smov [#allocation6]   ;;  %v42_v1 = vmul.f32 %v36_v0, %v36_v0  ;;  %40 = vst [vmem:[#allocation5] sm:$0xff] %v36_v0  ;;  %s52_s15 = int_to_ptr.vmem [resolvable:$true] %s51_s15 }
   0x8   :  { %s62_s20 = sshll.u32 %s163_s19, 4  ;;  %s64_s0 = sshll.u32 %s190_s2, 4  ;;  %s63_s20 = int_to_ptr.vmem [resolvable:$true] %s62_s20  ;;  %s65_s0 = int_to_ptr.hbm [resolvable:$true] %s64_s0 }
   0x9   :  { %56 = dma.vmem_to_hbm [thread:$0]  %s52_s15, 128, %s54_s18, [#allocation4]   ;;  %45 = vst [vmem:[#allocation6] sm:$0xff] %v42_v1 }
   0xa   :  { %67 = dma.vmem_to_hbm [thread:$0]  %s63_s20, 128, %s65_s0, [#allocation7]  }
   0xb   :  { %157 = dma.done.wait [#allocation4], 128  }
   0xc   :  { %158 = vsyncadd [#allocation4], 4294967168 }
   0xd   :  { %159 = dma.done.wait [#allocation7], 128  }
   0xe   :  { %160 = vsyncadd [#allocation7], 4294967168 }
   0xf   :  { %76 = vsyncpa [#allocation3], 1 }
  0x10   :  { %77 = vsyncpa [#allocation4], 1 }
  0x11   :  { %78 = vsyncpa [#allocation7], 1 }

</bundles_post_ra>
